<compile_context>
chip_gen: v5e
topology: v5e:2x2
jax: 0.10.0
libtpu: 0.0.40
codegen_flags: <defaults>
</compile_context>

<pallas_src>
import functools

import numpy as np
import jax
import jax.numpy as jnp
from jax import lax
from jax.experimental import pallas as pl
from jax.experimental.pallas import tpu as pltpu


def _round_up(v, m):
    return ((v + m - 1) // m) * m


def _pick_tile(padded, candidates):
    for c in candidates:
        if c <= padded and padded % c == 0:
            return c
    return padded


# ----------------------------------------------------------------------------
# Fused kernel: pixel-norm (layer 0 only) + per-layer [x @ Wl + bl -> lrelu*sqrt(2)]
# grid = (M_tiles, num_layers); activation carried across the layer axis in VMEM scratch.
# ----------------------------------------------------------------------------
def _mapping_kernel(x_ref, w_ref, b_ref, z_ref, o_ref, act_ref, *,
                    normalize_input, true_in_dim, eps, alpha, gain):
    l = pl.program_id(1)

    @pl.when(l == 0)
    def _init():
        x = x_ref[...].astype(jnp.float32)
        if normalize_input:
            # Padded feature columns are zero, so sum-of-squares is exact; divide by the true dim.
            ssq = jnp.sum(x * x, axis=-1, keepdims=True)
            x = x * lax.rsqrt(ssq * (1.0 / true_in_dim) + eps)
        act_ref[...] = x
        z_ref[...] = x.astype(z_ref.dtype)

    # Dense layer l (wscale/lr_mul already folded into w_ref / b_ref in the wrapper).
    y = jnp.dot(act_ref[...], w_ref[0], preferred_element_type=jnp.float32)
    y = y + b_ref[0].astype(jnp.float32)
    y = jnp.where(y >= 0.0, y, y * alpha) * gain      # lrelu(0.2) * sqrt(2)
    act_ref[...] = y

    @pl.when(l == pl.num_programs(1) - 1)
    def _finalize():
        o_ref[...] = y.astype(o_ref.dtype)


# ----------------------------------------------------------------------------
# MappingNetwork forward (label_size == 0 path)
# ----------------------------------------------------------------------------
def mapping_network_forward(z, layer_weights, layer_biases, *,
                            normalize_input=True, num_outputs=None, repeat_output=True,
                            output_dim=None, use_wscale=True, wscale_gain=1.0,
                            lr_mul=0.01, eps=1e-8):
    """z: (batch, input_dim); layer_weights[i]: (out_c, in_c) (PyTorch layout); biases[i]: (out_c,)."""
    M, D = z.shape
    dtype = z.dtype
    L = len(layer_weights)
    assert L >= 1

    # One common padded feature width for every layer so the activation scratch / weight stack are
    # uniform; padding rows/cols are zero so they contribute nothing and stay zero layer to layer.
    dims = [D] + [int(w.shape[0]) for w in layer_weights]
    Fp = _round_up(max(max(dims), 128), 128)
    Mp = _round_up(max(M, 8), 8)

    x_pad = jnp.zeros((Mp, Fp), dtype).at[:M, :D].set(z)

    # Stack padded, pre-scaled (wscale / lr_mul folded) transposed weights and biases.
    w_stack = jnp.zeros((L, Fp, Fp), dtype)
    b_stack = jnp.zeros((L, 1, Fp), dtype)
    cur_dim = D
    for l, (wmat, bvec) in enumerate(zip(layer_weights, layer_biases)):
        out_c, in_c = wmat.shape
        assert in_c == cur_dim, "layer shapes must chain"
        fan_scale = wscale_gain / np.sqrt(in_c)
        wscale = fan_scale * lr_mul if use_wscale else lr_mul
        w_stack = w_stack.at[l, :in_c, :out_c].set((wmat.T * wscale).astype(dtype))
        b_stack = b_stack.at[l, 0, :out_c].set((bvec * lr_mul).astype(dtype))
        cur_dim = out_c

    tm = _pick_tile(Mp, (512, 256, 128, 64, 32, 16, 8))

    kernel = functools.partial(
        _mapping_kernel,
        normalize_input=bool(normalize_input),
        true_in_dim=float(D), eps=float(eps),
        alpha=0.2, gain=float(np.sqrt(2.0)),
    )

    itemsize = dtype.itemsize
    est = (2 * tm * Fp * itemsize          # x block (double-buffered)
           + 2 * Fp * Fp * itemsize        # weight block (double-buffered)
           + 2 * Fp * itemsize             # bias block
           + 2 * 2 * tm * Fp * itemsize    # z + w output blocks
           + tm * Fp * 4)                  # activation scratch (f32)
    vmem_limit = int(min(64 * 1024 * 1024, max(32 * 1024 * 1024, 2 * est)))

    z_pad, w_pad = pl.pallas_call(
        kernel,
        out_shape=(jax.ShapeDtypeStruct((Mp, Fp), dtype),
                   jax.ShapeDtypeStruct((Mp, Fp), dtype)),
        grid_spec=pltpu.PrefetchScalarGridSpec(
            num_scalar_prefetch=0,
            grid=(Mp // tm, L),
            in_specs=[
                pl.BlockSpec((tm, Fp), lambda i, l: (i, 0)),        # x (same block across l)
                pl.BlockSpec((1, Fp, Fp), lambda i, l: (l, 0, 0)),  # W_l^T (pre-scaled)
                pl.BlockSpec((1, 1, Fp), lambda i, l: (l, 0, 0)),   # b_l (pre-scaled)
            ],
            out_specs=[
                pl.BlockSpec((tm, Fp), lambda i, l: (i, 0)),        # normalized z (written at l=0)
                pl.BlockSpec((tm, Fp), lambda i, l: (i, 0)),        # w (written at l=last)
            ],
            scratch_shapes=[pltpu.VMEM((tm, Fp), jnp.float32)],
        ),
        compiler_params=pltpu.CompilerParams(
            dimension_semantics=("parallel", "arbitrary"),
            vmem_limit_bytes=vmem_limit,
        ),
    )(x_pad, w_stack, b_stack)

    z_out = z_pad[:M, :D] if normalize_input else z
    w = w_pad[:M, :cur_dim]

    # TODO(synk): label-embedding branch (label_size > 0) would add an extra dense + pixel-norm +
    # concat ahead of the layer stack; not exercised here since label_size == 0.

    wp = None
    if num_outputs is not None:
        if repeat_output:
            wp = jnp.broadcast_to(w[:, None, :], (M, num_outputs, cur_dim))
        else:
            wp = w.reshape(-1, num_outputs, output_dim)

    return {'z': z_out, 'label': None, 'w': w, 'wp': wp}


# ----------------------------------------------------------------------------
# Pure-JAX reference
# ----------------------------------------------------------------------------
def _reference_forward(z, layer_weights, layer_biases, *, normalize_input, num_outputs,
                       repeat_output, output_dim, use_wscale, wscale_gain, lr_mul, eps):
    if normalize_input:
        scale = lax.rsqrt(jnp.mean(jnp.square(z), axis=1, keepdims=True) + eps)
        z = z * scale
    w = z
    for wmat, bvec in zip(layer_weights, layer_biases):
        out_c, in_c = wmat.shape
        fan = wscale_gain / np.sqrt(in_c)
        wscale = fan * lr_mul if use_wscale else lr_mul
        y = w @ (wmat * wscale).T + bvec * lr_mul
        w = jnp.where(y >= 0.0, y, 0.2 * y) * np.sqrt(2.0)
    if num_outputs is not None:
        if repeat_output:
            wp = jnp.broadcast_to(w[:, None, :], (w.shape[0], num_outputs, w.shape[1]))
        else:
            wp = w.reshape(-1, num_outputs, output_dim)
    else:
        wp = None
    return {'z': z, 'w': w, 'wp': wp}


if __name__ == "__main__":
    key = jax.random.PRNGKey(0)

    batch, input_dim, hidden_dim, output_dim = 2, 32, 32, 32
    num_layers, num_outputs = 4, 8
    lr_mul, wscale_gain, eps = 0.01, 1.0, 1e-8
    use_wscale = True

    keys = jax.random.split(key, 2 * num_layers + 1)
    z = jax.random.normal(keys[0], (batch, input_dim), dtype=jnp.float32)

    layer_weights, layer_biases = [], []
    for i in range(num_layers):
        in_c = input_dim if i == 0 else hidden_dim
        out_c = output_dim if i == num_layers - 1 else hidden_dim
        # use_wscale init: weight ~ N(0, 1) / lr_mul; bias random (init is zero in the module, but a
        # nonzero bias exercises the fused bias path).
        wmat = jax.random.normal(keys[1 + 2 * i], (out_c, in_c), dtype=jnp.float32) / lr_mul
        bvec = jax.random.normal(keys[2 + 2 * i], (out_c,), dtype=jnp.float32)
        layer_weights.append(wmat)
        layer_biases.append(bvec)

    out = mapping_network_forward(
        z, layer_weights, layer_biases,
        normalize_input=True, num_outputs=num_outputs, repeat_output=True,
        output_dim=output_dim, use_wscale=use_wscale, wscale_gain=wscale_gain,
        lr_mul=lr_mul, eps=eps)
    out = jax.block_until_ready(out)

    ref = _reference_forward(
        z, layer_weights, layer_biases,
        normalize_input=True, num_outputs=num_outputs, repeat_output=True,
        output_dim=output_dim, use_wscale=use_wscale, wscale_gain=wscale_gain,
        lr_mul=lr_mul, eps=eps)

    assert out['z'].shape == (batch, input_dim)
    assert out['w'].shape == (batch, output_dim)
    assert out['wp'].shape == (batch, num_outputs, output_dim)
    assert jnp.allclose(out['z'], ref['z'], atol=1e-5, rtol=1e-5), "pixel-norm mismatch"
    assert jnp.allclose(out['w'], ref['w'], atol=2e-4, rtol=2e-4), "w mismatch"
    assert jnp.allclose(out['wp'], ref['wp'], atol=2e-4, rtol=2e-4), "wp mismatch"
    print("KERNEL_OK")
</pallas_src>

<mosaic_0001>
module attributes {stable_mosaic.version = 11 : i64} {
  func.func @_mapping_kernel(%arg0: i32, %arg1: i32, %arg2: memref<8x128xf32, #tpu.memory_space<vmem>>, %arg3: memref<1x128x128xf32, #tpu.memory_space<vmem>>, %arg4: memref<1x1x128xf32, #tpu.memory_space<vmem>>, %arg5: memref<8x128xf32, #tpu.memory_space<vmem>>, %arg6: memref<8x128xf32, #tpu.memory_space<vmem>>, %arg7: memref<8x128xf32, #tpu.memory_space<vmem>>) attributes {dimension_semantics = [#tpu.dimension_semantics<parallel>, #tpu.dimension_semantics<arbitrary>], iteration_bounds = array<i64: 1, 4>, scalar_prefetch = 0 : i64, scratch_operands = 1 : i64, tpu.core_type = #tpu.core_type<tc>, window_params = [{transform_indices = @transform_0, window_bounds = array<i64: 8, 128>}, {transform_indices = @transform_1, window_bounds = array<i64: 1, 128, 128>}, {transform_indices = @transform_2, window_bounds = array<i64: 1, 1, 128>}, {transform_indices = @transform_3, window_bounds = array<i64: 8, 128>}, {transform_indices = @transform_4, window_bounds = array<i64: 8, 128>}]} {
    %c0_i32 = arith.constant 0 : i32
    %0 = arith.cmpi eq, %arg1, %c0_i32 : i32
    %1 = arith.extui %0 : i1 to i32
    %c0_i32_0 = arith.constant 0 : i32
    %2 = arith.cmpi ne, %1, %c0_i32_0 : i32
    scf.if %2 {
      %c0_14 = arith.constant 0 : index
      %c0_15 = arith.constant 0 : index
      %22 = vector.load %arg2[%c0_14, %c0_15] : memref<8x128xf32, #tpu.memory_space<vmem>>, vector<8x128xf32>
      %23 = arith.mulf %22, %22 : vector<8x128xf32>
      %cst_16 = arith.constant dense<0.000000e+00> : vector<8xf32>
      %24 = vector.multi_reduction <add>, %23, %cst_16 [1] : vector<8x128xf32> to vector<8xf32>
      %25 = vector.shape_cast %24 : vector<8xf32> to vector<8x1xf32>
      %cst_17 = arith.constant 3.125000e-02 : f32
      %26 = vector.broadcast %cst_17 : f32 to vector<8x1xf32>
      %27 = arith.mulf %25, %26 : vector<8x1xf32>
      %cst_18 = arith.constant 9.99999993E-9 : f32
      %28 = vector.broadcast %cst_18 : f32 to vector<8x1xf32>
      %29 = arith.addf %27, %28 : vector<8x1xf32>
      %30 = math.rsqrt %29 : vector<8x1xf32>
      %31 = vector.broadcast %30 : vector<8x1xf32> to vector<8x128xf32>
      %32 = arith.mulf %22, %31 : vector<8x128xf32>
      %c0_19 = arith.constant 0 : index
      %c0_20 = arith.constant 0 : index
      %33 = vector.load %arg7[%c0_19, %c0_20] : memref<8x128xf32, #tpu.memory_space<vmem>>, vector<8x128xf32>
      tpu.vector_store %arg7[%c0_19, %c0_20], %32 {strides = array<i32>} : memref<8x128xf32, #tpu.memory_space<vmem>>, vector<8x128xf32>,
      %c0_21 = arith.constant 0 : index
      %c0_22 = arith.constant 0 : index
      %34 = vector.load %arg5[%c0_21, %c0_22] : memref<8x128xf32, #tpu.memory_space<vmem>>, vector<8x128xf32>
      tpu.vector_store %arg5[%c0_21, %c0_22], %32 {strides = array<i32>} : memref<8x128xf32, #tpu.memory_space<vmem>>, vector<8x128xf32>,
    } else {
    }
    %c0 = arith.constant 0 : index
    %c0_1 = arith.constant 0 : index
    %3 = vector.load %arg7[%c0, %c0_1] : memref<8x128xf32, #tpu.memory_space<vmem>>, vector<8x128xf32>
    %c0_2 = arith.constant 0 : index
    %c0_3 = arith.constant 0 : index
    %c0_4 = arith.constant 0 : index
    %4 = vector.load %arg3[%c0_2, %c0_3, %c0_4] : memref<1x128x128xf32, #tpu.memory_space<vmem>>, vector<1x128x128xf32>
    %5 = vector.shape_cast %4 : vector<1x128x128xf32> to vector<128x128xf32>
    %cst = arith.constant dense<0.000000e+00> : vector<8x128xf32>
    %6 = tpu.matmul %3, %5, %cst {dimension_numbers = #tpu.dot_dimension_numbers<[1], [0], [0], [1], [0, 0, 1, 1], [], []>} : vector<8x128xf32>, vector<128x128xf32>, vector<8x128xf32> -> vector<8x128xf32>
    %c0_5 = arith.constant 0 : index
    %c0_6 = arith.constant 0 : index
    %c0_7 = arith.constant 0 : index
    %7 = vector.load %arg4[%c0_5, %c0_6, %c0_7] : memref<1x1x128xf32, #tpu.memory_space<vmem>>, vector<1x1x128xf32>
    %8 = vector.shape_cast %7 : vector<1x1x128xf32> to vector<1x128xf32>
    %9 = vector.broadcast %8 : vector<1x128xf32> to vector<8x128xf32>
    %10 = arith.addf %6, %9 : vector<8x128xf32>
    %cst_8 = arith.constant 0.000000e+00 : f32
    %11 = vector.broadcast %cst_8 : f32 to vector<8x128xf32>
    %12 = arith.cmpf oge, %10, %11 : vector<8x128xf32>
    %cst_9 = arith.constant 2.000000e-01 : f32
    %13 = vector.broadcast %cst_9 : f32 to vector<8x128xf32>
    %14 = arith.mulf %10, %13 : vector<8x128xf32>
    %15 = arith.select %12, %10, %14 : vector<8x128xi1>, vector<8x128xf32>
    %cst_10 = arith.constant 1.41421354 : f32
    %16 = vector.broadcast %cst_10 : f32 to vector<8x128xf32>
    %17 = arith.mulf %15, %16 : vector<8x128xf32>
    %c0_11 = arith.constant 0 : index
    %c0_12 = arith.constant 0 : index
    %18 = vector.load %arg7[%c0_11, %c0_12] : memref<8x128xf32, #tpu.memory_space<vmem>>, vector<8x128xf32>
    tpu.vector_store %arg7[%c0_11, %c0_12], %17 {strides = array<i32>} : memref<8x128xf32, #tpu.memory_space<vmem>>, vector<8x128xf32>,
    %c3_i32 = arith.constant 3 : i32
    %19 = arith.cmpi eq, %arg1, %c3_i32 : i32
    %20 = arith.extui %19 : i1 to i32
    %c0_i32_13 = arith.constant 0 : i32
    %21 = arith.cmpi ne, %20, %c0_i32_13 : i32
    scf.if %21 {
      %c0_14 = arith.constant 0 : index
      %c0_15 = arith.constant 0 : index
      %22 = vector.load %arg6[%c0_14, %c0_15] : memref<8x128xf32, #tpu.memory_space<vmem>>, vector<8x128xf32>
      tpu.vector_store %arg6[%c0_14, %c0_15], %17 {strides = array<i32>} : memref<8x128xf32, #tpu.memory_space<vmem>>, vector<8x128xf32>,
    } else {
    }
    return
  }
  func.func @transform_0(%arg0: i32, %arg1: i32) -> (i32, i32) {
    %c0_i32 = arith.constant 0 : i32
    %c0_i32_0 = arith.constant 0 : i32
    return %arg0, %c0_i32 : i32, i32
  }
  func.func @transform_1(%arg0: i32, %arg1: i32) -> (i32, i32, i32) {
    %c0_i32 = arith.constant 0 : i32
    %c0_i32_0 = arith.constant 0 : i32
    %c0_i32_1 = arith.constant 0 : i32
    return %arg1, %c0_i32, %c0_i32_0 : i32, i32, i32
  }
  func.func @transform_2(%arg0: i32, %arg1: i32) -> (i32, i32, i32) {
    %c0_i32 = arith.constant 0 : i32
    %c0_i32_0 = arith.constant 0 : i32
    %c0_i32_1 = arith.constant 0 : i32
    return %arg1, %c0_i32, %c0_i32_0 : i32, i32, i32
  }
  func.func @transform_3(%arg0: i32, %arg1: i32) -> (i32, i32) {
    %c0_i32 = arith.constant 0 : i32
    %c0_i32_0 = arith.constant 0 : i32
    return %arg0, %c0_i32 : i32, i32
  }
  func.func @transform_4(%arg0: i32, %arg1: i32) -> (i32, i32) {
    %c0_i32 = arith.constant 0 : i32
    %c0_i32_0 = arith.constant 0 : i32
    return %arg0, %c0_i32 : i32, i32
  }
}

</mosaic_0001>

<bundles_post_ra>
// kernel: tpu_custom_call.1
= control target key start
LH: loop header
LB: loop body
LE: loop exit
PB: predicated region body
PF: predicated region fallthrough
CT: control target
= control target key end

     0   :  { %10 = vsyncpa [#allocation4], 0  ;;  %s1004_s0 = inlined_call_operand.hbm [shape: f32[8,128], index: 0, kind: input, shape index: {}]   ;;  %s1005_s1 = inlined_call_operand.hbm [shape: f32[4,128,128], index: 1, kind: input, shape index: {}]   ;;  %s1006_s2 = inlined_call_operand.hbm [shape: f32[4,1,128], index: 2, kind: input, shape index: {}]   ;;  %s1007_s3 = inlined_call_operand.hbm [shape: f32[8,128], index: 3, kind: output, shape index: {0}]   ;;  %s1008_s4 = inlined_call_operand.hbm [shape: f32[8,128], index: 4, kind: output, shape index: {1}]  }
   0x1   :  { %11 = vsyncpa [#allocation7], 0 }
   0x2   :  { %13 = vsyncpa [#allocation7 + $0x1], 0 }
   0x3   :  { %14 = vsyncpa [#allocation5], 0 }
   0x4   :  { %15 = vsyncpa [#allocation11], 0  ;;  %s834_s15 = smov 0   ;;  %s836_s16 = smov 0  }
   0x5   :  { %s838_s17 = smov 0   ;;  %s840_s18 = smov 0  }
   0x6   :  { %s842_s19 = smov 0   ;;  %s844_s20 = smov 0  }
   0x7 LB: > { %s30_s21 = sadd.s32 1, %s798_s19  ;;  %s66_s22 = sadd.s32 1, %s790_s17  ;;  %s802_s20 = sphi %s844_s20, %s21_s20   ;;  %s798_s19 = sphi %s842_s19, %s1017_s19   ;;  %s794_s18 = sphi %s840_s18, %s1016_s18   ;;  %s790_s17 = sphi %s838_s17, %s1015_s17   ;;  %s786_s16 = sphi %s836_s16, %s1014_s16   ;;  %s782_s15 = sphi %s834_s15, %s1013_s15  }
   0x8   : > { %p31_p0 = scmp.ge.s32.totalorder %s30_s21, 4  ;;  %p73_p1 = scmp.ne.s32.totalorder %s790_s17, %s786_s16 }
   0x9   : > { %p74_p2 = scmp.eq.s32.totalorder %s802_s20, 0  ;;  %p532_p4 = scmp.lt.s32.totalorder %s802_s20, 4 }
   0xa   : > { %s1019_s21 = smov (%p31_p0, %s30_s21), 0  ;;  %s195_s25 = sand.u32 1, %s802_s20  }
   0xb   : > { %p871_p3 = por %p74_p2, %p73_p1  ;;  %s63_s24 = ssub.s32 %s798_s19, %s1019_s21 }
   0xc   : > { %p64_p5 = scmp.eq.s32.totalorder %s63_s24, 0  ;;  %s197_s26 = sand.u32 1, %s790_s17  }
   0xd   : > { %s503_s27 = sshll.u32 %s798_s19, 7  ;;  %s489_s29 = sshll.u32 %s197_s26, 7 }
   0xe   : > { %s882_s28 = scalar_select %p64_p5, %s790_s17, %s66_s22  }
   0xf   : > { %s204_s6 = scalar_lea.hbm %s1005_s1, %s503_s27  ;;  %s199_s8 = scalar_lea.vmem [#allocation6], %s489_s29 }
  0x10   : > { %s205_s7 = sshll.u32 %s204_s6, 4  ;;  %s207_s9 = sshll.u32 %s199_s8, 4  ;;  %s206_s7 = int_to_ptr.hbm [resolvable:$true] %s205_s7  ;;  %s208_s9 = int_to_ptr.vmem [resolvable:$true] %s207_s9 }
  0x11   : > { %p893_p6 = pnand %p532_p4, %p871_p3  ;;  %s196_s11 = scalar_lea.sflag [#allocation7], %s195_s25 }
  0x12   : > { %s804_s12 = smov 128   ;;  %s805_s13 = smov 8  }
  0x13   : > { %527 = dma.hbm_to_vmem [thread:$0]  (!%p893_p6), %s206_s7, 2048, %s208_s9, %s196_s11, %s804_s12, %s804_s12, %s805_s13  }
  0x14   : > { %s900_s14 = sadd.s32 4294967295, %s802_s20   ;;  %p79_p7 = scmp.ne.s32.totalorder %s786_s16, %s782_s15 }
  0x15   : > { %p80_p8 = scmp.eq.s32.totalorder %s900_s14, 0  ;;  %p486_p9 = scmp.ge.s32.totalorder %s802_s20, 1 }
  0x16   : > { %p168_p10 = scmp.lt.s32.totalorder %s802_s20, 5  ;;  %s182_s27 = sshll.u32 %s1004_s0, 4  ;;  %s183_s27 = int_to_ptr.hbm [resolvable:$true] %s182_s27 }
  0x17   : > { %p909_p11 = por %p80_p8, %p79_p7  ;;  %s806_s15 = smov [#allocation3]  }
  0x18   : > { %p913_p12 = pnand %p486_p9, %p168_p10  ;;  %s184_s29 = sshll.u32 %s806_s15, 4  ;;  %s185_s29 = int_to_ptr.vmem [resolvable:$true] %s184_s29 }
  0x19   : > { %s223_s6 = scalar_lea.hbm %s1006_s2, %s798_s19  ;;  %s220_s8 = scalar_lea.vmem [#allocation8], %s197_s26 }
  0x1a   : > { %p520_p13 = pneg %p913_p12  ;;  %s225_s7 = sshll.u32 %s223_s6, 4  ;;  %s226_s7 = int_to_ptr.hbm [resolvable:$true] %s225_s7 }
  0x1b   : > { %s227_s9 = sshll.u32 %s220_s8, 4  ;;  %236 = sbr.rel (%p913_p12) target bundleno = 366 (0x16e), region = 32  ;;  %s228_s9 = int_to_ptr.vmem [resolvable:$true] %s227_s9 }
  0x1c   : > { %p521_p0 = pnand %p520_p13, %p80_p8 }
  0x1d   : > { %530 = dma.hbm_to_vmem [thread:$0]  (!%p893_p6), %s226_s7, 16, %s228_s9, %s196_s11  }
  0x1e   : > { %523 = dma.hbm_to_vmem [thread:$0]  (!%p521_p0), %s183_s27, 128, %s185_s29, [#allocation4]  }
  0x20   : > { %765 = dma.done.wait (%p80_p8), [#allocation4], 128  }
  0x21   : > { %767 = vsyncadd (%p80_p8), [#allocation4], 4294967168  ;;  %s243_s12 = sand.u32 1, %s900_s14   ;;  %s245_s26 = sand.u32 1, %s786_s16  }
  0x22   : > { %s494_s13 = sshll.u32 %s245_s26, 7  ;;  %s244_s24 = scalar_lea.sflag [#allocation7], %s243_s12 }
  0x23   : > { %s940_s25 = scalar_lea.vmem [#allocation6], %s494_s13 }
  0x24   : > { %769 = dma.done.wait (%p909_p11), %s244_s24, 2064  }
  0x25   : > { %771 = vsyncadd (%p909_p11), %s244_s24, 4294965232  ;;  %s946_s10 = scalar_lea.vmem [#allocation8], %s245_s26  ;;  %p495_p1 = scmp.ne.s32.totalorder %s794_s18, 0 }
  0x27   : > { %284 = sbr.rel (%p495_p1) target bundleno = 189 (0xbd), region = 48 }
  0x2c   : > { %v285_v0 = vld [vmem:[#allocation3] sm:$0xff] }
  0x2d   : > { %v286_v1 = vmul.f32 %v285_v0, %v285_v0 }
  0x2f   : > { %287 = vadd.xlane.f32.xlu0 %v286_v1 }
  0xa2   : > { %v288_v2 = vpop.xlane.xlu0 %287 }
  0xa3   : > { %v289_v3 = vmul.f32 0.03125, %v288_v2 }
  0xa5   : > { %v290_v4 = vadd.f32 1e-08, %v289_v3 }
  0xa7   : > { %591 = vrsqrt.f32 %v290_v4  ;;  %vm297_vm1 = vweird.f32 %v290_v4 }
  0xad   : > { %v592_v5 = vpop.eup %591 }
  0xae   : > { %v292_v6 = vmul.f32 %v592_v5, %v290_v4  ;;  %vm298_vm0 = vweird.f32 %v592_v5 }
  0xaf   : > { %vm299_vm2 = vmor %vm297_vm1, %vm298_vm0 }
  0xb0   : > { %v293_v7 = vmul.f32 %v592_v5, %v292_v6 }
  0xb2   : > { %v294_v8 = vmul.f32 0.5, %v293_v7 }
  0xb4   : > { %v295_v9 = vsub.f32 1.5, %v294_v8 }
  0xb6   : > { %v296_v10 = vmul.f32 %v592_v5, %v295_v9 }
  0xb8   : > { %v300_v11 = vsel %vm299_vm2, %v592_v5, %v296_v10 }
  0xb9   : > { %v301_v12 = vmul.f32 %v300_v11, %v285_v0 }
  0xbb   : > { %302 = vst [vmem:[#allocation2] sm:$0xff] %v301_v12 }
  0xbc   : > { %303 = vst [vmem:[#allocation9] sm:$0xff] %v301_v12 }
  0xbd PF: > { %v320_v13 = vld [vmem:[%s940_s25 + $0x78] sm:$0xff]  ;;  %v319_v14 = vld [vmem:[%s940_s25 + $0x70] sm:$0xff]  ;;  %v318_v15 = vld [vmem:[%s940_s25 + $0x68] sm:$0xff]  ;;  %p496_p2 = scmp.ne.s32.totalorder %s794_s18, 3 }
  0xbe   : > { %325 = vmatpush.msra.mxu0 %v320_v13  ;;  %v317_v16 = vld [vmem:[%s940_s25 + $0x60] sm:$0xff]  ;;  %v316_v17 = vld [vmem:[%s940_s25 + $0x58] sm:$0xff]  ;;  %v315_v18 = vld [vmem:[%s940_s25 + $0x50] sm:$0xff] }
  0xbf   : > { %v314_v19 = vld [vmem:[%s940_s25 + $0x48] sm:$0xff]  ;;  %v313_v20 = vld [vmem:[%s940_s25 + $0x40] sm:$0xff]  ;;  %v312_v21 = vld [vmem:[%s940_s25 + $0x38] sm:$0xff] }
  0xc0   : > { %326 = vmatpush.msra.mxu0 %v319_v14  ;;  %v311_v22 = vld [vmem:[%s940_s25 + $0x30] sm:$0xff]  ;;  %v310_v23 = vld [vmem:[%s940_s25 + $0x28] sm:$0xff]  ;;  %v309_v24 = vld [vmem:[%s940_s25 + $0x20] sm:$0xff] }
  0xc1   : > { %v308_v25 = vld [vmem:[%s940_s25 + $0x18] sm:$0xff]  ;;  %v307_v26 = vld [vmem:[%s940_s25 + $0x10] sm:$0xff]  ;;  %v306_v27 = vld [vmem:[%s940_s25 + $0x8] sm:$0xff] }
  0xc2   : > { %327 = vmatpush.msra.mxu0 %v318_v15  ;;  %v305_v28 = vld [vmem:[%s940_s25] sm:$0xff]  ;;  %v304_v29 = vld [vmem:[#allocation2] sm:$0xff] }
  0xc3   : > { %v593_v30 = vld [vmem:[%s946_s10] ss:$0 sm:$0xff] }
  0xc4   : > { %328 = vmatpush.msra.mxu0 %v317_v16 }
  0xc6   : > { %329 = vmatpush.msra.mxu0 %v316_v17 }
  0xc8   : > { %330 = vmatpush.msra.mxu0 %v315_v18 }
  0xca   : > { %331 = vmatpush.msra.mxu0 %v314_v19 }
  0xcc   : > { %332 = vmatpush.msra.mxu0 %v313_v20 }
  0xce   : > { %333 = vmatpush.msra.mxu0 %v312_v21 }
  0xd0   : > { %334 = vmatpush.msra.mxu0 %v311_v22 }
  0xd2   : > { %335 = vmatpush.msra.mxu0 %v310_v23 }
  0xd4   : > { %336 = vmatpush.msra.mxu0 %v309_v24 }
  0xd6   : > { %337 = vmatpush.msra.mxu0 %v308_v25 }
  0xd8   : > { %338 = vmatpush.msra.mxu0 %v307_v26 }
  0xda   : > { %339 = vmatpush.msra.mxu0 %v306_v27 }
  0xdc   : > { %340 = vmatpush.msra.mxu0 %v305_v28 }
  0xdd   : > { %341 = vmatmul.f32.vlgmr.msra.gmra.mxu0 %v304_v29 }
 0x15a   : > { %v342_v31 = vpop.f32.mrf.mxu0 }
 0x15b   : > { %v343_v32 = vadd.f32 %v593_v30, %v342_v31 }
 0x15d   : > { %vm345_vm3 = vcmp.ge.f32.partialorder %v343_v32, 0.0  ;;  %v346_v33 = vmul.f32 0.2, %v343_v32 }
 0x15e   : > { %353 = sbr.rel (%p496_p2) target bundleno = 356 (0x164), region = 52 }
 0x15f   : > { %v347_v34 = vsel %vm345_vm3, %v343_v32, %v346_v33 }
 0x160   : > { %v348_v35 = vmul.f32 1.4142135, %v347_v34 }
 0x162   : > { %349 = vst [vmem:[#allocation2] sm:$0xff] %v348_v35 }
 0x163   : > { %354 = vst [vmem:[#allocation10] sm:$0xff] %v348_v35 }
 0x164 PF: > { %p534_p3 = scmp.eq.s32.totalorder %s900_s14, 3  ;;  %s365_s23 = sshll.u32 %s1007_s3, 4  ;;  %s366_s23 = int_to_ptr.hbm [resolvable:$true] %s365_s23 }
 0x165   : > { %s807_s27 = smov [#allocation9]   ;;  %s808_s29 = smov [#allocation10]  }
 0x166   : > { %s363_s15 = sshll.u32 %s807_s27, 4  ;;  %s377_s18 = sshll.u32 %s808_s29, 4  ;;  %s364_s15 = int_to_ptr.vmem [resolvable:$true] %s363_s15  ;;  %s378_s18 = int_to_ptr.vmem [resolvable:$true] %s377_s18 }
 0x167   : > { %513 = dma.vmem_to_hbm [thread:$0]  (%p534_p3), %s364_s15, 128, %s366_s23, [#allocation5]  }
 0x168   : > { %s379_s6 = sshll.u32 %s1008_s4, 4  ;;  %s380_s6 = int_to_ptr.hbm [resolvable:$true] %s379_s6 }
 0x169   : > { %515 = dma.vmem_to_hbm [thread:$0]  (%p534_p3), %s378_s18, 128, %s380_s6, [#allocation11]  }
 0x16a   : > { %773 = dma.done.wait (%p534_p3), [#allocation5], 128  }
 0x16b   : > { %775 = vsyncadd (%p534_p3), [#allocation5], 4294967168 }
 0x16c   : > { %777 = dma.done.wait (%p534_p3), [#allocation11], 128  }
 0x16d   : > { %779 = vsyncadd (%p534_p3), [#allocation11], 4294967168 }
 0x16e PF: > { %s21_s20 = sadd.s32 1, %s802_s20   ;;  %s1013_s15 = smov %s786_s16 }
 0x16f   : > { %p18_p4 = scmp.ge.s32.totalorder %s21_s20, 6   ;;  %s1014_s16 = smov %s790_s17 }
 0x170   : > { %s1015_s17 = smov %s882_s28  ;;  %s1016_s18 = smov %s798_s19 }
 0x171   : > { %s1017_s19 = smov %s1019_s21  ;;  %20 = sbr.rel (!%p18_p4) target bundleno = 7 (0x7), region = 104 }
 0x176   :  { %398 = vsyncpa [#allocation4], 1 }
 0x177   :  { %400 = vsyncpa [#allocation4 + $0x1], 1 }
 0x178   :  { %401 = vsyncpa [#allocation7], 1 }
 0x179   :  { %403 = vsyncpa [#allocation7 + $0x1], 1 }
 0x17a   :  { %404 = vsyncpa [#allocation5], 1 }
 0x17b   :  { %406 = vsyncpa [#allocation5 + $0x1], 1 }
 0x17c   :  { %407 = vsyncpa [#allocation11], 1 }

</bundles_post_ra>
